<compile_context>
chip_gen: v7x
topology: tpu7x:2x2x1
jax: 0.10.0
libtpu: 0.0.40
codegen_flags: <defaults>
</compile_context>

<pallas_src>
import functools
import math

import jax
import jax.numpy as jnp
from jax.experimental import pallas as pl
from jax.experimental.pallas import tpu as pltpu


def _conv_kernel(x_ref, w_ref, b_ref, o_ref, *, KH, KW, Wp, wide, batch_block):
    # x_ref: (B_blk, C_in, L)            flattened padded input (+ KW-1 tail)
    # w_ref: (C_out, C_in*KH*KW)          weights, tap-major / channel-minor cols
    # b_ref: (C_out, 1)                   bias (zeros if module had bias=False)
    # o_ref: (B_blk, C_out, H_out*Wp)     lane-dense "wide" output slab
    w = w_ref[...]
    b = b_ref[...]
    for bb in range(batch_block):
        # Build the im2col slab: one contiguous slice per tap, stacked along
        # the contraction axis.  Row order = (kh, kw) major, channel minor,
        # which matches the weight regrouping done in the wrapper.
        cols = []
        for kh in range(KH):
            for kw in range(KW):
                start = kh * Wp + kw  # static offset
                cols.append(x_ref[bb, :, start:start + wide])  # (C_in, wide)
        col = jnp.concatenate(cols, axis=0)  # (C_in*KH*KW, wide)

        # Single fused contraction on the MXU, f32 accumulation.
        acc = jnp.dot(w, col, preferred_element_type=jnp.float32)
        acc = acc + b  # broadcast (C_out, 1) over the wide spatial axis
        o_ref[bb] = acc.astype(o_ref.dtype)


def conv2d_fft_forward(x, weight, bias=None, padding=0, batch_block=1):
    """Forward pass equivalent to Conv2d_fft(...).forward(x) with int padding."""
    N, C_in, H, W = x.shape
    C_out, C_in_w, KH, KW = weight.shape
    assert C_in == C_in_w
    p = int(padding)
    Hp, Wp = H + 2 * p, W + 2 * p
    H_out, W_out = Hp - KH + 1, Wp - KW + 1
    assert H_out >= 1 and W_out >= 1
    assert N % batch_block == 0

    # --- wrapper-side layout glue ------------------------------------------
    if p > 0:
        x = jnp.pad(x, ((0, 0), (0, 0), (p, p), (p, p)))
    # Flatten spatial dims and append KW-1 tail zeros so the last tap's
    # contiguous "wide" slice stays in bounds.
    L = Hp * Wp + (KW - 1)
    x_flat = x.reshape(N, C_in, Hp * Wp)
    if KW > 1:
        x_flat = jnp.pad(x_flat, ((0, 0), (0, 0), (0, KW - 1)))

    # Regroup weights so the single matmul's K axis is (kh, kw, ci)-ordered.
    w_r = jnp.transpose(weight, (0, 2, 3, 1)).reshape(C_out, KH * KW * C_in)
    if bias is None:
        bias = jnp.zeros((C_out,), dtype=x.dtype)
    b_r = bias.reshape(C_out, 1).astype(jnp.float32)

    wide = H_out * Wp  # wide output columns per image
    kernel = functools.partial(_conv_kernel, KH=KH, KW=KW, Wp=Wp, wide=wide,
                               batch_block=batch_block)

    grid_spec = pltpu.PrefetchScalarGridSpec(
        num_scalar_prefetch=0,
        grid=(N // batch_block,),
        in_specs=[
            pl.BlockSpec((batch_block, C_in, L), lambda n: (n, 0, 0)),
            pl.BlockSpec((C_out, KH * KW * C_in), lambda n: (0, 0)),
            pl.BlockSpec((C_out, 1), lambda n: (0, 0)),
        ],
        out_specs=pl.BlockSpec((batch_block, C_out, wide),
                               lambda n: (n, 0, 0)),
    )

    out_wide = pl.pallas_call(
        kernel,
        grid_spec=grid_spec,
        out_shape=jax.ShapeDtypeStruct((N, C_out, wide), x.dtype),
        compiler_params=pltpu.CompilerParams(
            dimension_semantics=("parallel",)),
    )(x_flat, w_r, b_r)

    # Final reshape + column trim done in the wrapper (keeps kernel stores
    # lane-dense).  Columns [W_out:Wp) of each output row are garbage.
    out = out_wide.reshape(N, C_out, H_out, Wp)[..., :W_out]
    return out


if __name__ == "__main__":
    # Module config: Conv2d_fft(in_channels=4, out_channels=8, kernel_size=(3,3),
    #                           bias=True, padding=p)
    N, C_in, C_out, H, W = 2, 4, 8, 16, 16
    KH, KW = 3, 3

    key = jax.random.PRNGKey(0)
    kx, kw_, kb = jax.random.split(key, 3)

    # Deterministic parameter init matching Conv_fft.__init__:
    # uniform(-stdv, stdv) with stdv = 1/sqrt(in_channels * KH * KW)
    stdv = 1.0 / math.sqrt(C_in * KH * KW)
    weight = jax.random.uniform(kw_, (C_out, C_in, KH, KW), jnp.float32,
                                minval=-stdv, maxval=stdv)
    bias = jax.random.uniform(kb, (C_out,), jnp.float32,
                              minval=-stdv, maxval=stdv)
    x = jax.random.normal(kx, (N, C_in, H, W), jnp.float32)

    # Exercise both padding=0 (per-image grid steps, parallel axis) and
    # padding=1 (whole batch in one grid step).
    for padding, bblk in ((0, 1), (1, 2)):
        out = conv2d_fft_forward(x, weight, bias, padding=padding,
                                 batch_block=bblk)
        out = jax.block_until_ready(out)

        ref = jax.lax.conv_general_dilated(
            x, weight, window_strides=(1, 1),
            padding=[(padding, padding), (padding, padding)],
            dimension_numbers=("NCHW", "OIHW", "NCHW"),
        ) + bias[None, :, None, None]
        assert out.shape == ref.shape, (out.shape, ref.shape)
        assert jnp.allclose(out, ref, rtol=1e-5, atol=1e-5)

    print("KERNEL_OK")
</pallas_src>

<mosaic_0001>
module attributes {stable_mosaic.version = 11 : i64} {
  func.func @_conv_kernel(%arg0: i32, %arg1: memref<1x4x258xf32, #tpu.memory_space<vmem>>, %arg2: memref<8x36xf32, #tpu.memory_space<vmem>>, %arg3: memref<8x1xf32, #tpu.memory_space<vmem>>, %arg4: memref<1x8x224xf32, #tpu.memory_space<vmem>>) attributes {dimension_semantics = [#tpu.dimension_semantics<parallel>], iteration_bounds = array<i64: 2>, scalar_prefetch = 0 : i64, scratch_operands = 0 : i64, tpu.core_type = #tpu.core_type<tc>, window_params = [{transform_indices = @transform_0, window_bounds = array<i64: 1, 4, 258>}, {pipeline_mode = #tpu.pipeline_mode<synchronous>, transform_indices = @transform_1, window_bounds = array<i64: 8, 36>}, {pipeline_mode = #tpu.pipeline_mode<synchronous>, transform_indices = @transform_2, window_bounds = array<i64: 8, 1>}, {transform_indices = @transform_3, window_bounds = array<i64: 1, 8, 224>}]} {
    %c0 = arith.constant 0 : index
    %c0_0 = arith.constant 0 : index
    %0 = vector.load %arg2[%c0, %c0_0] : memref<8x36xf32, #tpu.memory_space<vmem>>, vector<8x36xf32>
    %c0_1 = arith.constant 0 : index
    %c0_2 = arith.constant 0 : index
    %1 = vector.load %arg3[%c0_1, %c0_2] : memref<8x1xf32, #tpu.memory_space<vmem>>, vector<8x1xf32>
    %c0_3 = arith.constant 0 : index
    %c0_4 = arith.constant 0 : index
    %c0_5 = arith.constant 0 : index
    %2 = vector.load %arg1[%c0_3, %c0_4, %c0_5] : memref<1x4x258xf32, #tpu.memory_space<vmem>>, vector<1x4x224xf32>
    %3 = vector.shape_cast %2 : vector<1x4x224xf32> to vector<4x224xf32>
    %c0_6 = arith.constant 0 : index
    %c0_7 = arith.constant 0 : index
    %c1 = arith.constant 1 : index
    %4 = vector.load %arg1[%c0_6, %c0_7, %c1] : memref<1x4x258xf32, #tpu.memory_space<vmem>>, vector<1x4x224xf32>
    %5 = vector.shape_cast %4 : vector<1x4x224xf32> to vector<4x224xf32>
    %c0_8 = arith.constant 0 : index
    %c0_9 = arith.constant 0 : index
    %c2 = arith.constant 2 : index
    %6 = vector.load %arg1[%c0_8, %c0_9, %c2] : memref<1x4x258xf32, #tpu.memory_space<vmem>>, vector<1x4x224xf32>
    %7 = vector.shape_cast %6 : vector<1x4x224xf32> to vector<4x224xf32>
    %c0_10 = arith.constant 0 : index
    %c0_11 = arith.constant 0 : index
    %c16 = arith.constant 16 : index
    %8 = vector.load %arg1[%c0_10, %c0_11, %c16] : memref<1x4x258xf32, #tpu.memory_space<vmem>>, vector<1x4x224xf32>
    %9 = vector.shape_cast %8 : vector<1x4x224xf32> to vector<4x224xf32>
    %c0_12 = arith.constant 0 : index
    %c0_13 = arith.constant 0 : index
    %c17 = arith.constant 17 : index
    %10 = vector.load %arg1[%c0_12, %c0_13, %c17] : memref<1x4x258xf32, #tpu.memory_space<vmem>>, vector<1x4x224xf32>
    %11 = vector.shape_cast %10 : vector<1x4x224xf32> to vector<4x224xf32>
    %c0_14 = arith.constant 0 : index
    %c0_15 = arith.constant 0 : index
    %c18 = arith.constant 18 : index
    %12 = vector.load %arg1[%c0_14, %c0_15, %c18] : memref<1x4x258xf32, #tpu.memory_space<vmem>>, vector<1x4x224xf32>
    %13 = vector.shape_cast %12 : vector<1x4x224xf32> to vector<4x224xf32>
    %c0_16 = arith.constant 0 : index
    %c0_17 = arith.constant 0 : index
    %c32 = arith.constant 32 : index
    %14 = vector.load %arg1[%c0_16, %c0_17, %c32] : memref<1x4x258xf32, #tpu.memory_space<vmem>>, vector<1x4x224xf32>
    %15 = vector.shape_cast %14 : vector<1x4x224xf32> to vector<4x224xf32>
    %c0_18 = arith.constant 0 : index
    %c0_19 = arith.constant 0 : index
    %c33 = arith.constant 33 : index
    %16 = vector.load %arg1[%c0_18, %c0_19, %c33] : memref<1x4x258xf32, #tpu.memory_space<vmem>>, vector<1x4x224xf32>
    %17 = vector.shape_cast %16 : vector<1x4x224xf32> to vector<4x224xf32>
    %c0_20 = arith.constant 0 : index
    %c0_21 = arith.constant 0 : index
    %c34 = arith.constant 34 : index
    %18 = vector.load %arg1[%c0_20, %c0_21, %c34] : memref<1x4x258xf32, #tpu.memory_space<vmem>>, vector<1x4x224xf32>
    %19 = vector.shape_cast %18 : vector<1x4x224xf32> to vector<4x224xf32>
    %20 = tpu.concatenate %3, %5, %7, %9, %11, %13, %15, %17, %19 in 0 : vector<4x224xf32>, vector<4x224xf32>, vector<4x224xf32>, vector<4x224xf32>, vector<4x224xf32>, vector<4x224xf32>, vector<4x224xf32>, vector<4x224xf32>, vector<4x224xf32> -> vector<36x224xf32>
    %cst = arith.constant dense<0.000000e+00> : vector<8x224xf32>
    %21 = tpu.matmul %0, %20, %cst {dimension_numbers = #tpu.dot_dimension_numbers<[1], [0], [0], [1], [0, 0, 1, 1], [], []>} : vector<8x36xf32>, vector<36x224xf32>, vector<8x224xf32> -> vector<8x224xf32>
    %22 = vector.broadcast %1 : vector<8x1xf32> to vector<8x224xf32>
    %23 = arith.addf %21, %22 : vector<8x224xf32>
    %c0_22 = arith.constant 0 : index
    %c0_23 = arith.constant 0 : index
    %c0_24 = arith.constant 0 : index
    %24 = vector.load %arg4[%c0_22, %c0_23, %c0_24] : memref<1x8x224xf32, #tpu.memory_space<vmem>>, vector<1x8x224xf32>
    %25 = vector.shape_cast %24 : vector<1x8x224xf32> to vector<8x224xf32>
    %26 = vector.shape_cast %23 : vector<8x224xf32> to vector<1x8x224xf32>
    tpu.vector_store %arg4[%c0_22, %c0_23, %c0_24], %26 {strides = array<i32>} : memref<1x8x224xf32, #tpu.memory_space<vmem>>, vector<1x8x224xf32>,
    return
  }
  func.func @transform_0(%arg0: i32) -> (i32, i32, i32) {
    %c0_i32 = arith.constant 0 : i32
    %c0_i32_0 = arith.constant 0 : i32
    %c0_i32_1 = arith.constant 0 : i32
    return %arg0, %c0_i32, %c0_i32_0 : i32, i32, i32
  }
  func.func @transform_1(%arg0: i32) -> (i32, i32) {
    %c0_i32 = arith.constant 0 : i32
    %c0_i32_0 = arith.constant 0 : i32
    %c0_i32_1 = arith.constant 0 : i32
    return %c0_i32, %c0_i32_0 : i32, i32
  }
  func.func @transform_2(%arg0: i32) -> (i32, i32) {
    %c0_i32 = arith.constant 0 : i32
    %c0_i32_0 = arith.constant 0 : i32
    %c0_i32_1 = arith.constant 0 : i32
    return %c0_i32, %c0_i32_0 : i32, i32
  }
  func.func @transform_3(%arg0: i32) -> (i32, i32, i32) {
    %c0_i32 = arith.constant 0 : i32
    %c0_i32_0 = arith.constant 0 : i32
    %c0_i32_1 = arith.constant 0 : i32
    return %arg0, %c0_i32, %c0_i32_0 : i32, i32, i32
  }
}

</mosaic_0001>

<bundles_post_ra>
// kernel: tpu_custom_call.1
= control target key start
LH: loop header
LB: loop body
LE: loop exit
PB: predicated region body
PF: predicated region fallthrough
CT: control target
= control target key end

     0   :  { %8 = vsyncpa [#allocation3], 0  ;;  %s874_s0 = inlined_call_operand.hbm [shape: f32[2,4,258], index: 0, kind: input, shape index: {}]   ;;  %s875_s1 = inlined_call_operand.vmem [shape: f32[8,36], index: 1, kind: input, shape index: {}]   ;;  %s876_s2 = inlined_call_operand.vmem [shape: f32[8,1], index: 2, kind: input, shape index: {}]   ;;  %s877_s3 = inlined_call_operand.hbm [shape: f32[2,8,224], index: 3, kind: output, shape index: {}]  }
   0x1   :  { %10 = vsyncpa [#allocation3 + $0x1], 0 }
   0x2   :  { %11 = vsyncpa [#allocation4], 0 }
   0x3   :  { %13 = vsyncpa [#allocation4 + $0x1], 0  ;;  %s697_s12 = smov 0   ;;  %s699_s13 = smov 0  }
   0x4   :  { %s701_s14 = smov 0   ;;  %s703_s15 = smov 0  }
   0x5 LB: > { %s718_s16 = sadd.s32 4294967295, %s663_s15   ;;  %s445_s17 = sadd.s32 4294967294, %s663_s15   ;;  %s663_s15 = sphi %s703_s15, %s891_s15   ;;  %s659_s14 = sphi %s701_s14, %s890_s14   ;;  %s655_s13 = sphi %s699_s13, %s889_s13   ;;  %s651_s12 = sphi %s697_s12, %s888_s12  }
   0x6   : > { %s722_s18 = sadd.s32 1, %s663_s15   ;;  %s26_s19 = sadd.s32 1, %s659_s14 }
   0x7   : > { %s23_s20 = ssub.s32 %s663_s15, %s722_s18  ;;  %p33_p0 = scmp.ne.s32.totalorder %s659_s14, %s655_s13 }
   0x8   : > { %p24_p1 = scmp.eq.s32.totalorder %s23_s20, 0  ;;  %p34_p2 = scmp.eq.s32.totalorder %s663_s15, 0 }
   0x9   : > { %p39_p3 = scmp.ne.s32.totalorder %s655_s13, %s651_s12  ;;  %p40_p4 = scmp.eq.s32.totalorder %s718_s16, 0 }
   0xa   : > { %s734_s21 = scalar_select %p24_p1, %s659_s14, %s26_s19  }
   0xb   : > { %p35_p5 = por %p34_p2, %p33_p0  ;;  %p736_p6 = por %p40_p4, %p39_p3 }
   0xc   : > { %p105_p7 = scmp.eq.s32.totalorder %s718_s16, 1  ;;  %p111_p8 = scmp.eq.s32.totalorder %s445_s17, 1 }
   0xd   : > { %p483_p10 = scmp.lt.s32.totalorder %s663_s15, 2  ;;  %s137_s25 = sand.u32 1, %s659_s14  }
   0xe   : > { %p743_p11 = por %p105_p7, %p33_p0  ;;  %p747_p12 = por %p111_p8, %p39_p3 }
   0xf   : > { %s469_s26 = smul.u32 192, %s663_s15  ;;  %p758_p13 = pnand %p483_p10, %p35_p5 }
  0x10   : > { %s880_s23 = scalar_select %p743_p11, 1, 0 }
  0x11   : > { %s881_s24 = scalar_select %p747_p12, 1, 0 }
  0x12   : > { %s468_s27 = smul.u32 12, %s137_s25  ;;  %s756_s30 = scalar_lea.hbm %s874_s0, %s469_s26 }
  0x13   : > { %s138_s7 = scalar_lea.sflag [#allocation3], %s137_s25  ;;  %s567_s8 = scalar_lea.hbm %s756_s30, 192 }
  0x14   : > { %s141_s5 = scalar_lea.vmem [#allocation2], %s468_s27  ;;  %p568_p2 = scmp.ne.s32.totalorder %s756_s30, %s567_s8 }
  0x15   : > { %s149_s6 = sshll.u32 %s141_s5, 4  ;;  %p569_p3 = pneg %p758_p13  ;;  %s763_s6 = int_to_ptr.vmem [resolvable:$true] %s149_s6 }
  0x16   : > { %s572_s11 = scalar_lea.hbm %s874_s0, 384  ;;  %p573_p7 = scmp.lt.u32.totalorder %s756_s30, %s874_s0 }
  0x17   : > { %p570_p4 = pnand %p569_p3, %p568_p2  ;;  %p574_p8 = scmp.lt.u32.totalorder %s572_s11, %s567_s8 }
  0x18   : > { %p576_p9 = scmp.lt.u32.totalorder %s567_s8, %s756_s30 }
  0x19   : > { %p571_p5 = pneg %p570_p4  ;;  %p575_p10 = por %p574_p8, %p573_p7 }
  0x1b   : > { %p577_p0 = por %p576_p9, %p575_p10 }
  0x1d   : > { %p578_p1 = pnand %p577_p0, %p571_p5 }
  0x1f   : > { %581 = shalt.err (!%p578_p1)
}
  0x20   : > { %s582_s20 = scalar_lea.vmem %s763_s6, 192  ;;  %s665_s25 = smov [#allocation2]  }
  0x21   : > { %p583_p2 = scmp.ne.s32.totalorder %s763_s6, %s582_s20  ;;  %s587_s26 = sshll.u32 %s665_s25, 4  ;;  %s588_s26 = int_to_ptr.vmem [resolvable:$false] %s587_s26 }
  0x22   : > { %s589_s27 = scalar_lea.vmem %s588_s26, 384  ;;  %p590_p11 = scmp.lt.s32.totalorder %s763_s6, %s588_s26 }
  0x23   : > { %p585_p4 = pnand %p583_p2, %p569_p3  ;;  %p591_p7 = scmp.lt.s32.totalorder %s589_s27, %s582_s20 }
  0x25   : > { %p586_p12 = pneg %p585_p4  ;;  %p592_p8 = por %p591_p7, %p590_p11 }
  0x27   : > { %p593_p9 = pnand %p592_p8, %p586_p12 }
  0x29   : > { %596 = shalt.err (!%p593_p9)
}
  0x2a   : > { %478 = dma.hbm_to_vmem [thread:$0]  (!%p758_p13), %s756_s30, 192, %s763_s6, %s138_s7  }
  0x2b   : > { %p883_p0 = scmp.lt.s32.totalorder %s663_s15, 3  ;;  %p884_p1 = scmp.ge.s32.totalorder %s663_s15, 1 }
  0x2d   : > { %p155_p3 = pnand %p884_p1, %p883_p0 }
  0x2e   : > { %s796_s28 = sand.u32 (!%p155_p3), 1, %s655_s13  }
  0x2f   : > { %158 = sbr.rel (%p155_p3) target bundleno = 427 (0x1ab), region = 32  ;;  %s161_s5 = scalar_lea.sflag (!%p155_p3), [#allocation3], %s796_s28 }
  0x30   : > { %s470_s29 = smul.u32 (!%p155_p3), 12, %s796_s28 }
  0x32   : > { %s164_s8 = scalar_lea.vmem (!%p155_p3), [#allocation2], %s470_s29 }
  0x36   : > { %642 = dma.done.wait (%p736_p6), %s161_s5, 192  }
  0x37   : > { %644 = vsyncadd (%p736_p6), %s161_s5, 4294967104  ;;  %v189_v0 = vld [vmem:[%s164_s8] sm:$0xff]  ;;  %v190_v1 = vld [vmem:[%s164_s8 + $0x8] sm:$0xf]  ;;  %s666_s30 = smov 112   ;;  %s667_s4 = smov 127  }
  0x38   : > { %v194_v2 = vcombine.low %v189_v0, %v189_v0  ;;  %v244_v3 = vcombine.low %v190_v1, %v190_v1  ;;  %v192_v4 = vcombine.high %v189_v0, %v189_v0  ;;  %s668_s6 = smov 95   ;;  %s669_s7 = smov 126   ;;  %v672_v8 = vmov 0.0   ;;  %v188_v10 = vld [vmem:[%s876_s2] sm:$0xff] }
  0x39   : > { %s670_s9 = smov 110   ;;  %s671_s22 = smov 111   ;;  %351 = vmatprep.mubr.f32.mxu0 %v672_v8  ;;  %v673_v9 = vmov 0   ;;  %vm199_vm0 = vcmask 1039360   ;;  %vm265_vm1 = vcmask 1043456   ;;  %vm207_vm2 = vcmask 1031168  }
  0x3a   : > { %v537_v5 = vpack.i.bf16 %v189_v0, %v194_v2  ;;  %v542_v6 = vpack.i.bf16 %v244_v3, %v189_v0  ;;  %v532_v7 = vpack.i.bf16 %v192_v4, %v189_v0  ;;  %562 = vset.pattern.permute.xlu1 %v673_v9  ;;  %563 = vset.pattern.permute.xlu0 %v673_v9  ;;  %s674_s10 = smov 96   ;;  %s675_s11 = smov 94   ;;  %vm215_vm3 = vcmask 916480   ;;  %v187_v58 = vld [vmem:[%s875_s1] sm:$0xff] }
  0x3b   : > { %vm231_vm4 = vcmask 900096   ;;  %vm223_vm5 = vcmask 908288   ;;  %vm251_vm6 = vcmask 777216   ;;  %vm239_vm7 = vcmask 785408   ;;  %s450_s26 = sshll.u32 %s796_s28, 4  ;;  %s459_s27 = sshll.u32 %s718_s16, 8 }
  0x3c   : > { %538 = vrot.lane.b32.xlu1 %v537_v5, %s666_s30  ;;  %528 = vrot.lane.b32.xlu0 %v537_v5, %s667_s4  ;;  %vm262_vm8 = vcmask 769024   ;;  %vm279_vm9 = vcmask 293888   ;;  %s186_s29 = scalar_lea.vmem [#allocation5], %s450_s26  ;;  %s829_s4 = scalar_lea.hbm %s877_s3, %s459_s27 }
  0x3d   : > { %s375_s5 = sshll.u32 %s186_s29, 4  ;;  %s361_s16 = scalar_lea.sflag [#allocation4], %s796_s28  ;;  %s831_s5 = int_to_ptr.vmem [resolvable:$true] %s375_s5 }
  0x3e   : > { %p885_p11 = scmp.ne.s32.totalorder %s880_s23, 0 }
  0x40   : > { %543 = vrot.lane.b32.xlu1 %v542_v6, %s668_s6  ;;  %533 = vrot.lane.b32.xlu0 %v532_v7, %s669_s7  ;;  %s676_s7 = smov [#allocation5]  }
  0x44   : > { %553 = vrot.lane.b32.xlu1 %v537_v5, %s670_s9  ;;  %548 = vrot.lane.b32.xlu0 %v532_v7, %s671_s22  ;;  %s601_s9 = sshll.u32 %s676_s7, 4  ;;  %s602_s9 = int_to_ptr.vmem [resolvable:$false] %s601_s9 }
  0x45   : > { %s603_s22 = scalar_lea.vmem %s602_s9, 512  ;;  %p604_p5 = scmp.lt.s32.totalorder %s831_s5, %s602_s9 }
  0x48   : > { %245 = vrot.lane.b32.xlu1 %v194_v2, %s668_s6  ;;  %558 = vrot.lane.b32.xlu0 %v532_v7, %s674_s10  ;;  %s597_s6 = scalar_lea.vmem %s831_s5, 256 }
  0x49   : > { %p598_p6 = scmp.ne.s32.totalorder %s831_s5, %s597_s6  ;;  %p605_p10 = scmp.lt.s32.totalorder %s603_s22, %s597_s6 }
  0x4b   : > { %p599_p12 = pnand %p598_p6, %p885_p11  ;;  %p606_p2 = por %p605_p10, %p604_p5 }
  0x4c   : > { %258 = vrot.lane.b32.xlu0 %v192_v4, %s675_s11  ;;  %260 = vrot.lane.b32.xlu1 %v190_v1, %s675_s11 }
  0x4d   : > { %p600_p13 = pneg %p599_p12 }
  0x4f   : > { %p607_p4 = pnand %p606_p2, %p600_p13 }
  0x50   : > { %256 = vrot.lane.b32.xlu0 %v189_v0, %s675_s11  ;;  %276 = vperm.xlu1 %562, %v188_v10  }
  0xae   : > { %v539_v11 = vpop.permute.xlu1 %538  ;;  %v529_v12 = vpop.permute.xlu0 %528 }
  0xaf   : > { %v531_v13 = vunpack.i.h.bf16 %v529_v12  ;;  %v530_v14 = vunpack.i.l.bf16 %v529_v12  ;;  %v541_v15 = vunpack.i.h.bf16 %v539_v11  ;;  %v540_v16 = vunpack.i.l.bf16 %v539_v11 }
  0xb1   : > { %v200_v21 = vsel %vm199_vm0, %v530_v14, %v531_v13  ;;  %v267_v22 = vsel %vm265_vm1, %v192_v4, %v531_v13  ;;  %v216_v25 = vsel %vm215_vm3, %v540_v16, %v541_v15 }
  0xb2   : > { %v544_v17 = vpop.permute.xlu1 %543  ;;  %v534_v18 = vpop.permute.xlu0 %533  ;;  %v266_v29 = vsel %vm265_vm1, %v189_v0, %v200_v21 }
  0xb3   : > { %v536_v19 = vunpack.i.h.bf16 %v534_v18  ;;  %v535_v20 = vunpack.i.l.bf16 %v534_v18  ;;  %v546_v35 = vunpack.i.h.bf16 %v544_v17  ;;  %v545_v36 = vunpack.i.l.bf16 %v544_v17 }
  0xb5   : > { %v269_v23 = vsel %vm265_vm1, %v536_v19, %v541_v15  ;;  %v208_v24 = vsel %vm207_vm2, %v535_v20, %v536_v19  ;;  %v253_v44 = vsel %vm251_vm6, %v545_v36, %v546_v35 }
  0xb6   : > { %v554_v26 = vpop.permute.xlu1 %553  ;;  %v549_v27 = vpop.permute.xlu0 %548  ;;  %v460_v28 = vpack.c.bf16 %v269_v23, %v267_v22  ;;  %v268_v30 = vsel %vm265_vm1, %v208_v24, %v216_v25 }
  0xb7   : > { %v556_v31 = vunpack.i.h.bf16 %v554_v26  ;;  %v555_v32 = vunpack.i.l.bf16 %v554_v26  ;;  %v551_v33 = vunpack.i.h.bf16 %v549_v27  ;;  %v550_v34 = vunpack.i.l.bf16 %v549_v27 }
  0xb8   : > { %461 = vmatprep.subr.bf16.mxu0 %v460_v28  ;;  %v462_v37 = vpack.c.bf16 %v268_v30, %v266_v29 }
  0xb9   : > { %v232_v40 = vsel %vm231_vm4, %v555_v32, %v556_v31  ;;  %v224_v41 = vsel %vm223_vm5, %v550_v34, %v551_v33  ;;  %v271_v47 = vsel %vm265_vm1, %v551_v33, %v556_v31 }
  0xba   : > { %463 = vmatpush1.bf16.msra.mxu0 %v462_v37  ;;  %v246_v38 = vpop.permute.xlu1 %245  ;;  %v559_v39 = vpop.permute.xlu0 %558  ;;  %v270_v52 = vsel %vm265_vm1, %v224_v41, %v232_v40 }
  0xbb   : > { %v561_v42 = vunpack.i.h.bf16 %v559_v39  ;;  %v560_v43 = vunpack.i.l.bf16 %v559_v39  ;;  %v252_v45 = vsel %vm251_vm6, %v246_v38, %v545_v36 }
  0xbd   : > { %v240_v46 = vsel %vm239_vm7, %v560_v43, %v561_v42  ;;  %v273_v48 = vsel %vm265_vm1, %v561_v42, %v253_v44 }
  0xbe   : > { %v259_v49 = vpop.permute.xlu0 %258  ;;  %v261_v50 = vpop.permute.xlu1 %260  ;;  %v464_v51 = vpack.c.bf16 %v273_v48, %v271_v47  ;;  %v272_v53 = vsel %vm265_vm1, %v240_v46, %v252_v45 }
  0xbf   : > { %v264_v54 = vsel %vm262_vm8, %v259_v49, %v261_v50  ;;  %v466_v55 = vpack.c.bf16 %v272_v53, %v270_v52 }
  0xc0   : > { %465 = vmatprep.subr.bf16.mxu0 %v464_v51 }
  0xc1   : > { %467 = vmatpush1.bf16.msra.mxu0 %v466_v55 }
  0xc2   : > { %v257_v56 = vpop.permute.xlu0 %256  ;;  %451 = vmatprep.subr.msk.mxu0 %vm265_vm1, %v264_v54 }
  0xc3   : > { %v263_v57 = vsel %vm262_vm8, %v257_v56, %v259_v49 }
  0xc5   : > { %452 = vmatpush1.msk.msra.mxu0 %vm265_vm1, %v263_v57 }
  0xc6   : > { %453 = vmatmul.mubr.msk.f32.vlgmr.msra.gmra.mrb[0].mxu0 %vm279_vm9, %v187_v58 }
  0xcf   : > { %v277_v59 = vpop.permute.xlu1 %276 }
 0x199   : > { %v353_v60 = vpop.f32.mrb[0].mxu0 }
 0x19a   : > { %v354_v61 = vadd.f32 %v353_v60, %v277_v59  ;;  %v355_v62 = vpop.f32.mrb[1].mxu0 }
 0x19b   : > { %v356_v63 = vadd.f32 %v355_v62, %v277_v59 }
 0x19c   : > { %358 = vst [vmem:[%s186_s29] sm:$0xff] %v354_v61 }
 0x19d   : > { %359 = vst.msk [vmem:[%s186_s29 + $0x8] sm:$0xff] %vm239_vm7, %v356_v63 }
 0x19e   : > { %610 = shalt.err (!%p607_p4)
}
 0x19f   : > { %s611_s28 = scalar_lea.hbm %s829_s4, 256  ;;  %s615_s17 = scalar_lea.hbm %s877_s3, 512 }
 0x1a0   : > { %p612_p7 = scmp.ne.s32.totalorder %s829_s4, %s611_s28  ;;  %p616_p0 = scmp.lt.u32.totalorder %s829_s4, %s877_s3 }
 0x1a1   : > { %p617_p1 = scmp.lt.u32.totalorder %s615_s17, %s611_s28  ;;  %p619_p6 = scmp.lt.u32.totalorder %s611_s28, %s829_s4 }
 0x1a2   : > { %p613_p8 = pnand %p612_p7, %p885_p11 }
 0x1a3   : > { %p618_p3 = por %p617_p1, %p616_p0 }
 0x1a4   : > { %p614_p9 = pneg %p613_p8 }
 0x1a5   : > { %p620_p12 = por %p619_p6, %p618_p3 }
 0x1a7   : > { %p621_p13 = pnand %p620_p12, %p614_p9 }
 0x1a9   : > { %624 = shalt.err (!%p621_p13)
}
 0x1aa   : > { %473 = dma.vmem_to_hbm [thread:$0]  (%p885_p11), %s831_s5, 256, %s829_s4, %s361_s16  }
 0x1ab PF: > { %s387_s25 = sand.u32 1, %s651_s12   ;;  %p886_p5 = scmp.ne.s32.totalorder %s881_s24, 0 }
 0x1ac   : > { %p887_p10 = scmp.ge.s32.totalorder %s663_s15, 2  ;;  %s388_s26 = scalar_lea.sflag [#allocation4], %s387_s25 }
 0x1ae   : > { %p480_p2 = pnand %p887_p10, %p886_p5 }
 0x1b0   : > { %646 = dma.done.wait (!%p480_p2), %s388_s26, 256  }
 0x1b1   : > { %648 = vsyncadd (!%p480_p2), %s388_s26, 4294967040  ;;  %p16_p4 = scmp.ge.s32.totalorder %s722_s18, 4   ;;  %s888_s12 = smov %s655_s13 }
 0x1b2   : > { %s889_s13 = smov %s659_s14  ;;  %s890_s14 = smov %s734_s21 }
 0x1b3   : > { %s891_s15 = smov %s722_s18  ;;  %18 = sbr.rel (!%p16_p4) target bundleno = 5 (0x5), region = 77 }
 0x1ba   :  { %393 = vsyncpa [#allocation3], 1 }
 0x1bb   :  { %395 = vsyncpa [#allocation3 + $0x1], 1 }
 0x1bc   :  { %396 = vsyncpa [#allocation4], 1 }
 0x1bd   :  { %398 = vsyncpa [#allocation4 + $0x1], 1 }

</bundles_post_ra>
